<compile_context>
chip_gen: v7x
topology: tpu7x:2x2x1
jax: 0.10.0
libtpu: 0.0.40
codegen_flags: <defaults>
</compile_context>

<pallas_src>
import jax
import jax.numpy as jnp
from jax.experimental import pallas as pl
from jax.experimental.pallas import tpu as pltpu


_VMEM_LIMIT_BYTES = 32 * 1024 * 1024    # safe on v5e/v6e (128 MiB) and v7x (64 MiB physical)
_BLOCK_BUDGET_BYTES = 20 * 1024 * 1024  # per-step working-set target (headroom below limit)


def _round_up(x: int, m: int) -> int:
    return ((x + m - 1) // m) * m


def _pick_batch_block(bs: int, per_batch_bytes: int) -> int:
    """Largest batch block that fits the VMEM budget.

    Returned value is either == bs or a multiple of 8, so the 2D lane-dense
    input/output blocks stay sublane-aligned.
    """
    budget_b = max(1, _BLOCK_BUDGET_BYTES // max(per_batch_bytes, 1))
    if budget_b >= bs:
        # Whole batch fits in one block. Keep >=2 "parallel" grid steps when the
        # batch is big enough so both v7x TensorCores get work (measured no-op on
        # single-TC v5e/v6e); for tiny batches a single step minimizes the
        # ~0.35 us per-grid-step overhead.
        half = _round_up(-(-bs // 2), 8)
        return half if half < bs else bs
    return min(bs, max(8, (budget_b // 8) * 8))


def _make_kernel(emb_sparse: int, n_stk: int):
    ds = emb_sparse * n_stk  # flat channel offset of the dense half

    def kernel(sparse_ref, dense_ref, mask_ref, pattern_ref, out_ref):
        # sparse_ref : (B, emb_s*n_stk)             lane-dense
        # dense_ref  : (B, n_stk_pnt, emb_d*n_stk)  reduction axis on sublanes
        # mask_ref   : (B, n_stk, n_stk_pnt)
        # pattern_ref: (n_stk, emb_d*n_stk)         one-hot: pattern[s, e*n_stk+s] = 1
        # out_ref    : (B, (emb_s+emb_d)*n_stk)     lane-dense
        dense_max = jnp.max(dense_ref[...], axis=1)        # (B, emb_d*n_stk), sublane reduce
        mask_max = jnp.max(mask_ref[...], axis=-1)         # (B, n_stk), tiny

        # Replicate mask_max across the flattened (emb, stroke) lane axis with a
        # tiny one-hot matmul on the otherwise-idle MXU:
        #   (mask_max @ pattern)[b, e*n_stk + s] == mask_max[b, s]   (exactly)
        # This avoids lane-axis tile/reshape relayouts on the XLU.
        mask_rep = jnp.dot(mask_max.astype(jnp.float32), pattern_ref[...],
                           preferred_element_type=jnp.float32)       # (B, emb_d*n_stk)

        masked = jnp.where(mask_rep != 0, dense_max, jnp.zeros_like(dense_max))

        # emb_s*n_stk is a multiple of 128 for the demo shapes, so both stores are
        # unmasked full-lane writes; if it were not, the split is still correct,
        # merely partially masked.
        out_ref[:, :ds] = sparse_ref[...].astype(out_ref.dtype)
        out_ref[:, ds:] = masked.astype(out_ref.dtype)

    return kernel


@jax.jit
def dense_to_sparse(sparse_fea, dense_fea, mask):
    """Pallas implementation of DenseToSparse.forward.

    sparse_fea: [bs, emb_s, n_stk]
    dense_fea : [bs, emb_d, n_stk, n_stk_pnt]
    mask      : [bs, n_stk, n_stk_pnt] (0/1)
    returns   : [bs, emb_s + emb_d, n_stk]
    """
    bs, emb_s, n_stk = sparse_fea.shape
    bs_d, emb_d, n_stk_d, n_stk_pnt = dense_fea.shape
    assert bs_d == bs and n_stk_d == n_stk
    assert mask.shape == (bs, n_stk, n_stk_pnt)

    out_emb = emb_s + emb_d
    out_dim = out_emb * n_stk
    out_dtype = sparse_fea.dtype
    # TODO(synk): if the surrounding model tolerates it, use bf16 I/O here to halve
    # HBM traffic on this purely bandwidth-bound kernel (cast to f32 in-kernel on v5e).

    # Restage inputs (see module docstring).
    dense_r = jnp.transpose(dense_fea, (0, 3, 1, 2)).reshape(bs, n_stk_pnt, emb_d * n_stk)
    sparse_r = sparse_fea.reshape(bs, emb_s * n_stk)
    # Constant one-hot replication pattern (constant-folded under jit, ~KBs).
    pattern = jnp.tile(jnp.eye(n_stk, dtype=jnp.float32), (1, emb_d))

    # Rough per-batch VMEM bytes: double-buffered inputs + output with (8,128)
    # tile padding (plus a negligible constant pattern). Used only to size blocks.
    isz = lambda a: jnp.dtype(a.dtype).itemsize
    per_batch = 2 * (
        isz(dense_r) * _round_up(n_stk_pnt, 8) * _round_up(emb_d * n_stk, 128)
        + isz(mask) * _round_up(n_stk, 8) * _round_up(n_stk_pnt, 128)
        + isz(sparse_r) * _round_up(emb_s * n_stk, 128)
        + jnp.dtype(out_dtype).itemsize * _round_up(out_dim, 128)
    )
    b_blk = _pick_batch_block(bs, per_batch)
    grid = (pl.cdiv(bs, b_blk),)

    kernel = _make_kernel(emb_s, n_stk)

    out_flat = pl.pallas_call(
        kernel,
        out_shape=jax.ShapeDtypeStruct((bs, out_dim), out_dtype),
        grid_spec=pltpu.PrefetchScalarGridSpec(
            num_scalar_prefetch=0,
            grid=grid,
            in_specs=[
                pl.BlockSpec((b_blk, emb_s * n_stk), lambda b: (b, 0)),
                pl.BlockSpec((b_blk, n_stk_pnt, emb_d * n_stk), lambda b: (b, 0, 0)),
                pl.BlockSpec((b_blk, n_stk, n_stk_pnt), lambda b: (b, 0, 0)),
                pl.BlockSpec((n_stk, emb_d * n_stk), lambda b: (0, 0)),
            ],
            out_specs=pl.BlockSpec((b_blk, out_dim), lambda b: (b, 0)),
        ),
        compiler_params=pltpu.CompilerParams(
            dimension_semantics=("parallel",),
            vmem_limit_bytes=_VMEM_LIMIT_BYTES,
        ),
    )(sparse_r, dense_r, mask, pattern)

    return out_flat.reshape(bs, out_emb, n_stk)


def dense_to_sparse_ref(sparse_fea, dense_fea, mask):
    """Plain-JAX reference matching the PyTorch forward."""
    dense_max = jnp.max(dense_fea, axis=3)                 # [bs, emb, n_stk]
    mask_max = jnp.max(mask, axis=2)[:, None, :]           # [bs, 1, n_stk]
    dense_max = jnp.where(mask_max == 0, 0.0, dense_max)
    return jnp.concatenate([sparse_fea, dense_max], axis=1)


def _run_case(key, bs, emb, n_stk, n_stk_pnt, zero_stroke):
    k1, k2, k3 = jax.random.split(key, 3)
    sparse_fea = jax.random.normal(k1, (bs, emb, n_stk), dtype=jnp.float32)
    dense_fea = jax.random.normal(k2, (bs, emb, n_stk, n_stk_pnt), dtype=jnp.float32)
    mask = (jax.random.uniform(k3, (bs, n_stk, n_stk_pnt)) > 0.3).astype(jnp.float32)
    mask = mask.at[:, zero_stroke, :].set(0.0)  # fully-masked stroke -> zeroed features

    out = jax.block_until_ready(dense_to_sparse(sparse_fea, dense_fea, mask))
    ref = dense_to_sparse_ref(sparse_fea, dense_fea, mask)
    assert out.shape == (bs, 2 * emb, n_stk)
    assert jnp.allclose(out, ref, atol=1e-6), "mismatch vs reference"


if __name__ == "__main__":
    key = jax.random.PRNGKey(0)
    k_a, k_b = jax.random.split(key)
    # Small single-block case (whole batch collapsed into one grid step).
    _run_case(k_a, bs=2, emb=32, n_stk=8, n_stk_pnt=16, zero_stroke=0)
    # Larger case exercising the multi-step "parallel" grid path (b_blk=16, 2 steps).
    _run_case(k_b, bs=32, emb=16, n_stk=16, n_stk_pnt=8, zero_stroke=3)
    print("KERNEL_OK")
</pallas_src>

<mosaic_0001>
module attributes {stable_mosaic.version = 11 : i64} {
  func.func @kernel(%arg0: i32, %arg1: memref<2x256xf32, #tpu.memory_space<vmem>>, %arg2: memref<2x16x256xf32, #tpu.memory_space<vmem>>, %arg3: memref<2x8x16xf32, #tpu.memory_space<vmem>>, %arg4: memref<8x256xf32, #tpu.memory_space<vmem>>, %arg5: memref<2x512xf32, #tpu.memory_space<vmem>>) attributes {dimension_semantics = [#tpu.dimension_semantics<parallel>], iteration_bounds = array<i64: 1>, scalar_prefetch = 0 : i64, scratch_operands = 0 : i64, tpu.core_type = #tpu.core_type<tc>, window_params = [{transform_indices = @transform_0, window_bounds = array<i64: 2, 256>}, {transform_indices = @transform_1, window_bounds = array<i64: 2, 16, 256>}, {transform_indices = @transform_2, window_bounds = array<i64: 2, 8, 16>}, {pipeline_mode = #tpu.pipeline_mode<synchronous>, transform_indices = @transform_3, window_bounds = array<i64: 8, 256>}, {transform_indices = @transform_4, window_bounds = array<i64: 2, 512>}]} {
    %c0 = arith.constant 0 : index
    %c0_0 = arith.constant 0 : index
    %c0_1 = arith.constant 0 : index
    %0 = vector.load %arg2[%c0, %c0_0, %c0_1] : memref<2x16x256xf32, #tpu.memory_space<vmem>>, vector<2x16x256xf32>
    %cst = arith.constant dense<0xFF800000> : vector<2x256xf32>
    %1 = vector.multi_reduction <maximumf>, %0, %cst [1] : vector<2x16x256xf32> to vector<2x256xf32>
    %c0_2 = arith.constant 0 : index
    %c0_3 = arith.constant 0 : index
    %c0_4 = arith.constant 0 : index
    %2 = vector.load %arg3[%c0_2, %c0_3, %c0_4] : memref<2x8x16xf32, #tpu.memory_space<vmem>>, vector<2x8x16xf32>
    %cst_5 = arith.constant dense<0xFF800000> : vector<2x8xf32>
    %3 = vector.multi_reduction <maximumf>, %2, %cst_5 [2] : vector<2x8x16xf32> to vector<2x8xf32>
    %c0_6 = arith.constant 0 : index
    %c0_7 = arith.constant 0 : index
    %4 = vector.load %arg4[%c0_6, %c0_7] : memref<8x256xf32, #tpu.memory_space<vmem>>, vector<8x256xf32>
    %cst_8 = arith.constant dense<0.000000e+00> : vector<2x256xf32>
    %5 = tpu.matmul %3, %4, %cst_8 {dimension_numbers = #tpu.dot_dimension_numbers<[1], [0], [0], [1], [0, 0, 1, 1], [], []>} : vector<2x8xf32>, vector<8x256xf32>, vector<2x256xf32> -> vector<2x256xf32>
    %cst_9 = arith.constant 0.000000e+00 : f32
    %6 = vector.broadcast %cst_9 : f32 to vector<2x256xf32>
    %7 = arith.cmpf one, %5, %6 : vector<2x256xf32>
    %cst_10 = arith.constant 0.000000e+00 : f32
    %8 = vector.broadcast %cst_10 : f32 to vector<2x256xf32>
    %9 = arith.select %7, %1, %8 : vector<2x256xi1>, vector<2x256xf32>
    %c0_11 = arith.constant 0 : index
    %c0_12 = arith.constant 0 : index
    %10 = vector.load %arg1[%c0_11, %c0_12] : memref<2x256xf32, #tpu.memory_space<vmem>>, vector<2x256xf32>
    %c0_13 = arith.constant 0 : index
    %c0_14 = arith.constant 0 : index
    %11 = vector.load %arg5[%c0_13, %c0_14] : memref<2x512xf32, #tpu.memory_space<vmem>>, vector<2x256xf32>
    tpu.vector_store %arg5[%c0_13, %c0_14], %10 {strides = array<i32>} : memref<2x512xf32, #tpu.memory_space<vmem>>, vector<2x256xf32>,
    %c0_15 = arith.constant 0 : index
    %c256 = arith.constant 256 : index
    %12 = vector.load %arg5[%c0_15, %c256] : memref<2x512xf32, #tpu.memory_space<vmem>>, vector<2x256xf32>
    tpu.vector_store %arg5[%c0_15, %c256], %9 {strides = array<i32>} : memref<2x512xf32, #tpu.memory_space<vmem>>, vector<2x256xf32>,
    return
  }
  func.func @transform_0(%arg0: i32) -> (i32, i32) {
    %c0_i32 = arith.constant 0 : i32
    %c0_i32_0 = arith.constant 0 : i32
    return %arg0, %c0_i32 : i32, i32
  }
  func.func @transform_1(%arg0: i32) -> (i32, i32, i32) {
    %c0_i32 = arith.constant 0 : i32
    %c0_i32_0 = arith.constant 0 : i32
    %c0_i32_1 = arith.constant 0 : i32
    return %arg0, %c0_i32, %c0_i32_0 : i32, i32, i32
  }
  func.func @transform_2(%arg0: i32) -> (i32, i32, i32) {
    %c0_i32 = arith.constant 0 : i32
    %c0_i32_0 = arith.constant 0 : i32
    %c0_i32_1 = arith.constant 0 : i32
    return %arg0, %c0_i32, %c0_i32_0 : i32, i32, i32
  }
  func.func @transform_3(%arg0: i32) -> (i32, i32) {
    %c0_i32 = arith.constant 0 : i32
    %c0_i32_0 = arith.constant 0 : i32
    %c0_i32_1 = arith.constant 0 : i32
    return %c0_i32, %c0_i32_0 : i32, i32
  }
  func.func @transform_4(%arg0: i32) -> (i32, i32) {
    %c0_i32 = arith.constant 0 : i32
    %c0_i32_0 = arith.constant 0 : i32
    return %arg0, %c0_i32 : i32, i32
  }
}

</mosaic_0001>

<bundles_post_ra>
// kernel: tile.9
= control target key start
LH: loop header
LB: loop body
LE: loop exit
PB: predicated region body
PF: predicated region fallthrough
CT: control target
= control target key end

     0   :  { %vm55_vm0 = vcmask 1041409   ;;  %vm59_vm1 = vcmask 1042434   ;;  %vm63_vm2 = vcmask 1043459   ;;  %vm67_vm3 = vcmask 1044484   ;;  %s1367_s27 = smov 112   ;;  %s1368_s11 = smov 120   ;;  %s2478_s0 = inlined_call_operand.vmem [shape: f32[8,32,8], index: 0, kind: input, shape index: {}]   ;;  %s2479_s1 = inlined_call_operand.vmem [shape: f32[8,256], index: 1, kind: output, shape index: {}]  }
   0x1   :  { %vm71_vm4 = vcmask 1045509   ;;  %vm75_vm5 = vcmask 1046534   ;;  %vm79_vm6 = vcmask 1047559   ;;  %v1114_v0 = vld [vmem:[%s2478_s0 + $0xe] sm:$0x1]   ;;  %s1369_s30 = smov 104  }
   0x2   :  { %v1115_v1 = vld [vmem:[%s2478_s0 + $0x2d] sm:$0x2]   ;;  %v1097_v10 = vld [vmem:[%s2478_s0 + $0xf] sm:$0x1]   ;;  %v1122_v24 = vld [vmem:[%s2478_s0 + $0x1e] sm:$0x1]  }
   0x3   :  { %v1116_v2 = vld [vmem:[%s2478_s0 + $0x4c] sm:$0x4]   ;;  %v125_v4 = vsel %vm55_vm0, %v1115_v1, %v1114_v0  ;;  %v1098_v11 = vld [vmem:[%s2478_s0 + $0x2e] sm:$0x2]   ;;  %v1123_v25 = vld [vmem:[%s2478_s0 + $0x3d] sm:$0x2]  }
   0x4   :  { %v1117_v3 = vld [vmem:[%s2478_s0 + $0x6b] sm:$0x8]   ;;  %v129_v8 = vsel %vm59_vm1, %v1116_v2, %v125_v4  ;;  %v56_v13 = vsel %vm55_vm0, %v1098_v11, %v1097_v10  ;;  %v1099_v14 = vld [vmem:[%s2478_s0 + $0x4d] sm:$0x4]   ;;  %v1124_v26 = vld [vmem:[%s2478_s0 + $0x5c] sm:$0x4]   ;;  %v159_v29 = vsel %vm55_vm0, %v1123_v25, %v1122_v24 }
   0x5   :  { %v1118_v5 = vld [vmem:[%s2478_s0 + $0x8a] sm:$0x10]   ;;  %v133_v12 = vsel %vm63_vm2, %v1117_v3, %v129_v8  ;;  %v1100_v15 = vld [vmem:[%s2478_s0 + $0x6c] sm:$0x8]   ;;  %v60_v18 = vsel %vm59_vm1, %v1099_v14, %v56_v13  ;;  %v1125_v30 = vld [vmem:[%s2478_s0 + $0x7b] sm:$0x8]   ;;  %v163_v35 = vsel %vm59_vm1, %v1124_v26, %v159_v29 }
   0x6   :  { %v1119_v6 = vld [vmem:[%s2478_s0 + $0xa9] sm:$0x20]   ;;  %v1101_v16 = vld [vmem:[%s2478_s0 + $0x8b] sm:$0x10]   ;;  %v137_v17 = vsel %vm67_vm3, %v1118_v5, %v133_v12  ;;  %v64_v23 = vsel %vm63_vm2, %v1100_v15, %v60_v18  ;;  %v1126_v31 = vld [vmem:[%s2478_s0 + $0x9a] sm:$0x10]   ;;  %v167_v40 = vsel %vm63_vm2, %v1125_v30, %v163_v35 }
   0x7   :  { %v1120_v7 = vld [vmem:[%s2478_s0 + $0xc8] sm:$0x40]   ;;  %v1102_v19 = vld [vmem:[%s2478_s0 + $0xaa] sm:$0x20]   ;;  %v141_v22 = vsel %vm71_vm4, %v1119_v6, %v137_v17  ;;  %v68_v28 = vsel %vm67_vm3, %v1101_v16, %v64_v23  ;;  %v1127_v32 = vld [vmem:[%s2478_s0 + $0xb9] sm:$0x20]   ;;  %v171_v45 = vsel %vm67_vm3, %v1126_v31, %v167_v40 }
   0x8   :  { %v1121_v9 = vld [vmem:[%s2478_s0 + $0xe7] sm:$0x80]   ;;  %v1103_v20 = vld [vmem:[%s2478_s0 + $0xc9] sm:$0x40]   ;;  %v145_v27 = vsel %vm75_vm5, %v1120_v7, %v141_v22  ;;  %v72_v34 = vsel %vm71_vm4, %v1102_v19, %v68_v28  ;;  %v1128_v36 = vld [vmem:[%s2478_s0 + $0xd8] sm:$0x40]   ;;  %v175_v50 = vsel %vm71_vm4, %v1127_v32, %v171_v45 }
   0x9   :  { %v1104_v21 = vld [vmem:[%s2478_s0 + $0xe8] sm:$0x80]   ;;  %v149_v33 = vsel %vm79_vm6, %v1121_v9, %v145_v27  ;;  %v1129_v37 = vld [vmem:[%s2478_s0 + $0xf7] sm:$0x80]   ;;  %v1105_v38 = vld [vmem:[%s2478_s0 + $0x1f] sm:$0x1]   ;;  %v76_v39 = vsel %vm75_vm5, %v1103_v20, %v72_v34  ;;  %v179_v55 = vsel %vm75_vm5, %v1128_v36, %v175_v50 }
   0xa   :  { %150 = vrot.lane.b32.xlu1 %v149_v33, %s1367_s27  ;;  %v1106_v41 = vld [vmem:[%s2478_s0 + $0x3e] sm:$0x2]   ;;  %v80_v44 = vsel %vm79_vm6, %v1104_v21, %v76_v39  ;;  %v1139_v53 = vld [vmem:[%s2478_s0 + $0x1d] sm:$0x1]   ;;  %v183_v61 = vsel %vm79_vm6, %v1129_v37, %v179_v55  ;;  %v1131_v5 = vld [vmem:[%s2478_s0 + $0xd] sm:$0x1]  }
   0xb   :  { %v1107_v42 = vld [vmem:[%s2478_s0 + $0x5d] sm:$0x4]   ;;  %v90_v46 = vsel %vm55_vm0, %v1106_v41, %v1105_v38  ;;  %81 = vrot.lane.b32.xlu0 %v80_v44, %s1368_s11  ;;  %v1140_v54 = vld [vmem:[%s2478_s0 + $0x3c] sm:$0x2]   ;;  %v1132_v6 = vld [vmem:[%s2478_s0 + $0x2c] sm:$0x2]  }
   0xc   :  { %v1108_v43 = vld [vmem:[%s2478_s0 + $0x7c] sm:$0x8]   ;;  %v94_v51 = vsel %vm59_vm1, %v1107_v42, %v90_v46  ;;  %v228_v57 = vsel %vm55_vm0, %v1140_v54, %v1139_v53  ;;  %v1141_v58 = vld [vmem:[%s2478_s0 + $0x5b] sm:$0x4]   ;;  %v1133_v7 = vld [vmem:[%s2478_s0 + $0x4b] sm:$0x4]   ;;  %v194_v10 = vsel %vm55_vm0, %v1132_v6, %v1131_v5 }
   0xd   :  { %v1109_v47 = vld [vmem:[%s2478_s0 + $0x9b] sm:$0x10]   ;;  %v98_v56 = vsel %vm63_vm2, %v1108_v43, %v94_v51  ;;  %v1142_v59 = vld [vmem:[%s2478_s0 + $0x7a] sm:$0x8]   ;;  %v232_v63 = vsel %vm59_vm1, %v1141_v58, %v228_v57  ;;  %v1134_v11 = vld [vmem:[%s2478_s0 + $0x6a] sm:$0x8]   ;;  %v198_v16 = vsel %vm59_vm1, %v1133_v7, %v194_v10 }
   0xe   :  { %v1110_v48 = vld [vmem:[%s2478_s0 + $0xba] sm:$0x20]   ;;  %v1143_v60 = vld [vmem:[%s2478_s0 + $0x99] sm:$0x10]   ;;  %v102_v62 = vsel %vm67_vm3, %v1109_v47, %v98_v56  ;;  %184 = vrot.lane.b32.xlu1 %v183_v61, %s1367_s27  ;;  %v236_v4 = vsel %vm63_vm2, %v1142_v59, %v232_v63  ;;  %v1135_v12 = vld [vmem:[%s2478_s0 + $0x89] sm:$0x10]   ;;  %v202_v20 = vsel %vm63_vm2, %v1134_v11, %v198_v16 }
   0xf   :  { %v1111_v49 = vld [vmem:[%s2478_s0 + $0xd9] sm:$0x40]   ;;  %v1144_v0 = vld [vmem:[%s2478_s0 + $0xb8] sm:$0x20]   ;;  %v106_v3 = vsel %vm71_vm4, %v1110_v48, %v102_v62  ;;  %v240_v9 = vsel %vm67_vm3, %v1143_v60, %v236_v4  ;;  %v1136_v13 = vld [vmem:[%s2478_s0 + $0xa8] sm:$0x20]   ;;  %v206_v25 = vsel %vm67_vm3, %v1135_v12, %v202_v20 }
  0x10   :  { %v1112_v52 = vld [vmem:[%s2478_s0 + $0xf8] sm:$0x80]   ;;  %v1145_v1 = vld [vmem:[%s2478_s0 + $0xd7] sm:$0x40]   ;;  %v110_v8 = vsel %vm75_vm5, %v1111_v49, %v106_v3  ;;  %v244_v15 = vsel %vm71_vm4, %v1144_v0, %v240_v9  ;;  %v1137_v17 = vld [vmem:[%s2478_s0 + $0xc7] sm:$0x40]   ;;  %v210_v30 = vsel %vm71_vm4, %v1136_v13, %v206_v25 }
  0x11   :  { %v1146_v2 = vld [vmem:[%s2478_s0 + $0xf6] sm:$0x80]   ;;  %v114_v14 = vsel %vm79_vm6, %v1112_v52, %v110_v8  ;;  %v1138_v18 = vld [vmem:[%s2478_s0 + $0xe6] sm:$0x80]   ;;  %v248_v19 = vsel %vm75_vm5, %v1145_v1, %v244_v15  ;;  %v1156_v21 = vld [vmem:[%s2478_s0 + $0x1c] sm:$0x1]   ;;  %v214_v35 = vsel %vm75_vm5, %v1137_v17, %v210_v30 }
  0x12   :  { %115 = vrot.lane.b32.xlu0 %v114_v14, %s1368_s11  ;;  %v1157_v22 = vld [vmem:[%s2478_s0 + $0x3b] sm:$0x2]   ;;  %v252_v24 = vsel %vm79_vm6, %v1146_v2, %v248_v19  ;;  %v1148_v34 = vld [vmem:[%s2478_s0 + $0xc] sm:$0x1]   ;;  %v218_v40 = vsel %vm79_vm6, %v1138_v18, %v214_v35  ;;  %v1173_v49 = vld [vmem:[%s2478_s0 + $0x1b] sm:$0x1]  }
  0x13   :  { %v1158_v23 = vld [vmem:[%s2478_s0 + $0x5a] sm:$0x4]   ;;  %v297_v26 = vsel %vm55_vm0, %v1157_v22, %v1156_v21  ;;  %253 = vrot.lane.b32.xlu1 %v252_v24, %s1369_s30  ;;  %v1149_v37 = vld [vmem:[%s2478_s0 + $0x2b] sm:$0x2]   ;;  %v1174_v50 = vld [vmem:[%s2478_s0 + $0x3a] sm:$0x2]  }
  0x14   :  { %v1159_v27 = vld [vmem:[%s2478_s0 + $0x79] sm:$0x8]   ;;  %v301_v31 = vsel %vm59_vm1, %v1158_v23, %v297_v26  ;;  %v1150_v38 = vld [vmem:[%s2478_s0 + $0x4a] sm:$0x4]   ;;  %v263_v42 = vsel %vm55_vm0, %v1149_v37, %v1148_v34  ;;  %v366_v53 = vsel %vm55_vm0, %v1174_v50, %v1173_v49  ;;  %v1175_v54 = vld [vmem:[%s2478_s0 + $0x59] sm:$0x4]  }
  0x15   :  { %v1160_v28 = vld [vmem:[%s2478_s0 + $0x98] sm:$0x10]   ;;  %v305_v36 = vsel %vm63_vm2, %v1159_v27, %v301_v31  ;;  %v1151_v39 = vld [vmem:[%s2478_s0 + $0x69] sm:$0x8]   ;;  %v267_v47 = vsel %vm59_vm1, %v1150_v38, %v263_v42  ;;  %v1176_v55 = vld [vmem:[%s2478_s0 + $0x78] sm:$0x8]   ;;  %v370_v59 = vsel %vm59_vm1, %v1175_v54, %v366_v53 }
  0x16   :  { %v1161_v29 = vld [vmem:[%s2478_s0 + $0xb7] sm:$0x20]   ;;  %v309_v41 = vsel %vm67_vm3, %v1160_v28, %v305_v36  ;;  %v1152_v43 = vld [vmem:[%s2478_s0 + $0x88] sm:$0x10]   ;;  %219 = vrot.lane.b32.xlu0 %v218_v40, %s1369_s30  ;;  %v271_v52 = vsel %vm63_vm2, %v1151_v39, %v267_v47  ;;  %v1177_v56 = vld [vmem:[%s2478_s0 + $0x97] sm:$0x10]   ;;  %v374_v0 = vsel %vm63_vm2, %v1176_v55, %v370_v59 }
  0x17   :  { %v1162_v32 = vld [vmem:[%s2478_s0 + $0xd6] sm:$0x40]   ;;  %v1153_v44 = vld [vmem:[%s2478_s0 + $0xa7] sm:$0x20]   ;;  %v313_v46 = vsel %vm71_vm4, %v1161_v29, %v309_v41  ;;  %v275_v58 = vsel %vm67_vm3, %v1152_v43, %v271_v52  ;;  %v1178_v60 = vld [vmem:[%s2478_s0 + $0xb6] sm:$0x20]   ;;  %v378_v5 = vsel %vm67_vm3, %v1177_v56, %v374_v0 }
  0x18   :  { %v1163_v33 = vld [vmem:[%s2478_s0 + $0xf5] sm:$0x80]   ;;  %v1154_v45 = vld [vmem:[%s2478_s0 + $0xc6] sm:$0x40]   ;;  %v317_v51 = vsel %vm75_vm5, %v1162_v32, %v313_v46  ;;  %v1179_v61 = vld [vmem:[%s2478_s0 + $0xd5] sm:$0x40]   ;;  %v279_v63 = vsel %vm71_vm4, %v1153_v44, %v275_v58  ;;  %v382_v11 = vsel %vm71_vm4, %v1178_v60, %v378_v5 }
  0x19   :  { %v1155_v48 = vld [vmem:[%s2478_s0 + $0xe5] sm:$0x80]   ;;  %v321_v57 = vsel %vm79_vm6, %v1163_v33, %v317_v51  ;;  %v1180_v62 = vld [vmem:[%s2478_s0 + $0xf4] sm:$0x80]   ;;  %s1370_s8 = smov 96   ;;  %v283_v4 = vsel %vm75_vm5, %v1154_v45, %v279_v63  ;;  %v386_v15 = vsel %vm75_vm5, %v1179_v61, %v382_v11  ;;  %s1372_s17 = smov 80  }
  0x1a   :  { %322 = vrot.lane.b32.xlu1 %v321_v57, %s1370_s8  ;;  %v1165_v1 = vld [vmem:[%s2478_s0 + $0xb] sm:$0x1]   ;;  %v287_v10 = vsel %vm79_vm6, %v1155_v48, %v283_v4  ;;  %v1190_v17 = vld [vmem:[%s2478_s0 + $0x1a] sm:$0x1]   ;;  %v390_v20 = vsel %vm79_vm6, %v1180_v62, %v386_v15  ;;  %v1182_v30 = vld [vmem:[%s2478_s0 + $0xa] sm:$0x1]  }
  0x1b   :  { %v1166_v2 = vld [vmem:[%s2478_s0 + $0x2a] sm:$0x2]   ;;  %288 = vrot.lane.b32.xlu0 %v287_v10, %s1370_s8  ;;  %v1191_v18 = vld [vmem:[%s2478_s0 + $0x39] sm:$0x2]   ;;  %s1371_s8 = smov 88   ;;  %s1374_s24 = smov 64  }
  0x1c   :  { %v1167_v3 = vld [vmem:[%s2478_s0 + $0x49] sm:$0x4]   ;;  %v332_v6 = vsel %vm55_vm0, %v1166_v2, %v1165_v1  ;;  %v1192_v19 = vld [vmem:[%s2478_s0 + $0x58] sm:$0x4]   ;;  %v435_v22 = vsel %vm55_vm0, %v1191_v18, %v1190_v17  ;;  %v1183_v33 = vld [vmem:[%s2478_s0 + $0x29] sm:$0x2]  }
  0x1d   :  { %v1168_v7 = vld [vmem:[%s2478_s0 + $0x68] sm:$0x8]   ;;  %v336_v12 = vsel %vm59_vm1, %v1167_v3, %v332_v6  ;;  %v1193_v23 = vld [vmem:[%s2478_s0 + $0x77] sm:$0x8]   ;;  %v439_v27 = vsel %vm59_vm1, %v1192_v19, %v435_v22  ;;  %v1184_v34 = vld [vmem:[%s2478_s0 + $0x48] sm:$0x4]   ;;  %v401_v38 = vsel %vm55_vm0, %v1183_v33, %v1182_v30 }
  0x1e   :  { %v1169_v8 = vld [vmem:[%s2478_s0 + $0x87] sm:$0x10]   ;;  %v340_v16 = vsel %vm63_vm2, %v1168_v7, %v336_v12  ;;  %v1194_v24 = vld [vmem:[%s2478_s0 + $0x96] sm:$0x10]   ;;  %391 = vrot.lane.b32.xlu1 %v390_v20, %s1371_s8  ;;  %v443_v32 = vsel %vm63_vm2, %v1193_v23, %v439_v27  ;;  %v1185_v35 = vld [vmem:[%s2478_s0 + $0x67] sm:$0x8]   ;;  %v405_v43 = vsel %vm59_vm1, %v1184_v34, %v401_v38 }
  0x1f   :  { %v1170_v9 = vld [vmem:[%s2478_s0 + $0xa6] sm:$0x20]   ;;  %v344_v21 = vsel %vm67_vm3, %v1169_v8, %v340_v16  ;;  %v1195_v25 = vld [vmem:[%s2478_s0 + $0xb5] sm:$0x20]   ;;  %v447_v37 = vsel %vm67_vm3, %v1194_v24, %v443_v32  ;;  %v1186_v39 = vld [vmem:[%s2478_s0 + $0x86] sm:$0x10]   ;;  %v409_v48 = vsel %vm63_vm2, %v1185_v35, %v405_v43 }
  0x20   :  { %v1171_v13 = vld [vmem:[%s2478_s0 + $0xc5] sm:$0x40]   ;;  %v348_v26 = vsel %vm71_vm4, %v1170_v9, %v344_v21  ;;  %v1196_v28 = vld [vmem:[%s2478_s0 + $0xd4] sm:$0x40]   ;;  %v1187_v40 = vld [vmem:[%s2478_s0 + $0xa5] sm:$0x20]   ;;  %v451_v42 = vsel %vm71_vm4, %v1195_v25, %v447_v37  ;;  %v413_v54 = vsel %vm67_vm3, %v1186_v39, %v409_v48 }
  0x21   :  { %v1172_v14 = vld [vmem:[%s2478_s0 + $0xe4] sm:$0x80]   ;;  %v1197_v29 = vld [vmem:[%s2478_s0 + $0xf3] sm:$0x80]   ;;  %v352_v31 = vsel %vm75_vm5, %v1171_v13, %v348_v26  ;;  %v1188_v41 = vld [vmem:[%s2478_s0 + $0xc4] sm:$0x40]   ;;  %v455_v47 = vsel %vm75_vm5, %v1196_v28, %v451_v42  ;;  %v417_v59 = vsel %vm71_vm4, %v1187_v40, %v413_v54 }
  0x22   :  { %v356_v36 = vsel %vm79_vm6, %v1172_v14, %v352_v31  ;;  %v1189_v44 = vld [vmem:[%s2478_s0 + $0xe3] sm:$0x80]   ;;  %v1207_v45 = vld [vmem:[%s2478_s0 + $0x19] sm:$0x1]   ;;  %v459_v53 = vsel %vm79_vm6, %v1197_v29, %v455_v47  ;;  %v1199_v61 = vld [vmem:[%s2478_s0 + $0x9] sm:$0x1]   ;;  %v421_v0 = vsel %vm75_vm5, %v1188_v41, %v417_v59 }
  0x23   :  { %357 = vrot.lane.b32.xlu0 %v356_v36, %s1371_s8  ;;  %v1208_v46 = vld [vmem:[%s2478_s0 + $0x38] sm:$0x2]   ;;  %460 = vrot.lane.b32.xlu1 %v459_v53, %s1372_s17  ;;  %v1200_v62 = vld [vmem:[%s2478_s0 + $0x28] sm:$0x2]   ;;  %v425_v6 = vsel %vm79_vm6, %v1189_v44, %v421_v0  ;;  %s1376_s3 = smov 48   ;;  %s1378_s12 = smov 32  }
  0x24   :  { %v504_v49 = vsel %vm55_vm0, %v1208_v46, %v1207_v45  ;;  %v1209_v50 = vld [vmem:[%s2478_s0 + $0x57] sm:$0x4]   ;;  %v1201_v63 = vld [vmem:[%s2478_s0 + $0x47] sm:$0x4]   ;;  %v470_v2 = vsel %vm55_vm0, %v1200_v62, %v1199_v61  ;;  %v1224_v13 = vld [vmem:[%s2478_s0 + $0x18] sm:$0x1]  }
  0x25   :  { %v1210_v51 = vld [vmem:[%s2478_s0 + $0x76] sm:$0x8]   ;;  %v508_v55 = vsel %vm59_vm1, %v1209_v50, %v504_v49  ;;  %v1202_v3 = vld [vmem:[%s2478_s0 + $0x66] sm:$0x8]   ;;  %v474_v8 = vsel %vm59_vm1, %v1201_v63, %v470_v2  ;;  %v1225_v14 = vld [vmem:[%s2478_s0 + $0x37] sm:$0x2]  }
  0x26   :  { %v1211_v52 = vld [vmem:[%s2478_s0 + $0x95] sm:$0x10]   ;;  %v512_v60 = vsel %vm63_vm2, %v1210_v51, %v508_v55  ;;  %v1203_v4 = vld [vmem:[%s2478_s0 + $0x85] sm:$0x10]   ;;  %v478_v12 = vsel %vm63_vm2, %v1202_v3, %v474_v8  ;;  %v1226_v15 = vld [vmem:[%s2478_s0 + $0x56] sm:$0x4]   ;;  %v573_v18 = vsel %vm55_vm0, %v1225_v14, %v1224_v13 }
  0x27   :  { %v1212_v56 = vld [vmem:[%s2478_s0 + $0xb4] sm:$0x20]   ;;  %v516_v1 = vsel %vm67_vm3, %v1211_v52, %v512_v60  ;;  %v1204_v5 = vld [vmem:[%s2478_s0 + $0xa4] sm:$0x20]   ;;  %426 = vrot.lane.b32.xlu0 %v425_v6, %s1372_s17  ;;  %v482_v17 = vsel %vm67_vm3, %v1203_v4, %v478_v12  ;;  %v1227_v19 = vld [vmem:[%s2478_s0 + $0x75] sm:$0x8]   ;;  %v577_v23 = vsel %vm59_vm1, %v1226_v15, %v573_v18 }
  0x28   :  { %v1213_v57 = vld [vmem:[%s2478_s0 + $0xd3] sm:$0x40]   ;;  %v520_v7 = vsel %vm71_vm4, %v1212_v56, %v516_v1  ;;  %v1205_v9 = vld [vmem:[%s2478_s0 + $0xc3] sm:$0x40]   ;;  %v1228_v20 = vld [vmem:[%s2478_s0 + $0x94] sm:$0x10]   ;;  %v486_v22 = vsel %vm71_vm4, %v1204_v5, %v482_v17  ;;  %v581_v28 = vsel %vm63_vm2, %v1227_v19, %v577_v23 }
  0x29   :  { %v1214_v58 = vld [vmem:[%s2478_s0 + $0xf2] sm:$0x80]   ;;  %v1206_v10 = vld [vmem:[%s2478_s0 + $0xe2] sm:$0x80]   ;;  %v524_v11 = vsel %vm75_vm5, %v1213_v57, %v520_v7  ;;  %v1229_v21 = vld [vmem:[%s2478_s0 + $0xb3] sm:$0x20]   ;;  %v490_v27 = vsel %vm75_vm5, %v1205_v9, %v486_v22  ;;  %v585_v33 = vsel %vm67_vm3, %v1228_v20, %v581_v28 }
  0x2a   :  { %v528_v16 = vsel %vm79_vm6, %v1214_v58, %v524_v11  ;;  %s1373_s17 = smov 72   ;;  %v1230_v24 = vld [vmem:[%s2478_s0 + $0xd2] sm:$0x40]   ;;  %v1216_v26 = vld [vmem:[%s2478_s0 + $0x8] sm:$0x1]   ;;  %v494_v32 = vsel %vm79_vm6, %v1206_v10, %v490_v27  ;;  %v589_v38 = vsel %vm71_vm4, %v1229_v21, %v585_v33  ;;  %s1380_s19 = smov 16  }
  0x2b   :  { %529 = vrot.lane.b32.xlu1 %v528_v16, %s1373_s17  ;;  %v1231_v25 = vld [vmem:[%s2478_s0 + $0xf1] sm:$0x80]   ;;  %v1217_v29 = vld [vmem:[%s2478_s0 + $0x27] sm:$0x2]   ;;  %495 = vrot.lane.b32.xlu0 %v494_v32, %s1373_s17  ;;  %v593_v43 = vsel %vm75_vm5, %v1230_v24, %v589_v38  ;;  %s2_s7 = smov 3  ;;  %s4_s8 = smov 12 }
  0x2c   :  { %v1218_v30 = vld [vmem:[%s2478_s0 + $0x46] sm:$0x4]   ;;  %v539_v34 = vsel %vm55_vm0, %v1217_v29, %v1216_v26  ;;  %v1241_v41 = vld [vmem:[%s2478_s0 + $0x17] sm:$0x1]   ;;  %v597_v49 = vsel %vm79_vm6, %v1231_v25, %v593_v43  ;;  %v1233_v57 = vld [vmem:[%s2478_s0 + $0x7] sm:$0x1]  }
  0x2d   :  { %v1219_v31 = vld [vmem:[%s2478_s0 + $0x65] sm:$0x8]   ;;  %v543_v39 = vsel %vm59_vm1, %v1218_v30, %v539_v34  ;;  %v1242_v42 = vld [vmem:[%s2478_s0 + $0x36] sm:$0x2]   ;;  %v1234_v58 = vld [vmem:[%s2478_s0 + $0x26] sm:$0x2]  }
  0x2e   :  { %v1220_v35 = vld [vmem:[%s2478_s0 + $0x84] sm:$0x10]   ;;  %v547_v44 = vsel %vm63_vm2, %v1219_v31, %v543_v39  ;;  %v642_v45 = vsel %vm55_vm0, %v1242_v42, %v1241_v41  ;;  %v1243_v46 = vld [vmem:[%s2478_s0 + $0x55] sm:$0x4]   ;;  %v1235_v59 = vld [vmem:[%s2478_s0 + $0x45] sm:$0x4]   ;;  %v608_v62 = vsel %vm55_vm0, %v1234_v58, %v1233_v57 }
  0x2f   :  { %v1221_v36 = vld [vmem:[%s2478_s0 + $0xa3] sm:$0x20]   ;;  %v1244_v47 = vld [vmem:[%s2478_s0 + $0x74] sm:$0x8]   ;;  %v551_v50 = vsel %vm67_vm3, %v1220_v35, %v547_v44  ;;  %v646_v51 = vsel %vm59_vm1, %v1243_v46, %v642_v45  ;;  %598 = vrot.lane.b32.xlu1 %v597_v49, %s1374_s24  ;;  %v1236_v63 = vld [vmem:[%s2478_s0 + $0x64] sm:$0x8]   ;;  %v612_v4 = vsel %vm59_vm1, %v1235_v59, %v608_v62 }
  0x30   :  { %v1222_v37 = vld [vmem:[%s2478_s0 + $0xc2] sm:$0x40]   ;;  %v1245_v48 = vld [vmem:[%s2478_s0 + $0x93] sm:$0x10]   ;;  %v555_v55 = vsel %vm71_vm4, %v1221_v36, %v551_v50  ;;  %v650_v56 = vsel %vm63_vm2, %v1244_v47, %v646_v51  ;;  %v1237_v0 = vld [vmem:[%s2478_s0 + $0x83] sm:$0x10]   ;;  %v616_v8 = vsel %vm63_vm2, %v1236_v63, %v612_v4 }
  0x31   :  { %v1223_v40 = vld [vmem:[%s2478_s0 + $0xe1] sm:$0x80]   ;;  %v1246_v52 = vld [vmem:[%s2478_s0 + $0xb2] sm:$0x20]   ;;  %v559_v60 = vsel %vm75_vm5, %v1222_v37, %v555_v55  ;;  %v654_v61 = vsel %vm67_vm3, %v1245_v48, %v650_v56  ;;  %v1238_v1 = vld [vmem:[%s2478_s0 + $0xa2] sm:$0x20]   ;;  %v620_v13 = vsel %vm67_vm3, %v1237_v0, %v616_v8 }
  0x32   :  { %v1247_v53 = vld [vmem:[%s2478_s0 + $0xd1] sm:$0x40]   ;;  %v563_v2 = vsel %vm79_vm6, %v1223_v40, %v559_v60  ;;  %v658_v3 = vsel %vm71_vm4, %v1246_v52, %v654_v61  ;;  %v1239_v5 = vld [vmem:[%s2478_s0 + $0xc1] sm:$0x40]   ;;  %v1258_v9 = vld [vmem:[%s2478_s0 + $0x16] sm:$0x1]   ;;  %v624_v18 = vsel %vm71_vm4, %v1238_v1, %v620_v13 }
  0x33   :  { %v1248_v54 = vld [vmem:[%s2478_s0 + $0xf0] sm:$0x80]   ;;  %v1240_v6 = vld [vmem:[%s2478_s0 + $0xe0] sm:$0x80]   ;;  %564 = vrot.lane.b32.xlu0 %v563_v2, %s1374_s24  ;;  %v662_v7 = vsel %vm75_vm5, %v1247_v53, %v658_v3  ;;  %v1259_v10 = vld [vmem:[%s2478_s0 + $0x35] sm:$0x2]   ;;  %v628_v23 = vsel %vm75_vm5, %v1239_v5, %v624_v18 }
  0x34   :  { %v1260_v11 = vld [vmem:[%s2478_s0 + $0x54] sm:$0x4]   ;;  %v666_v12 = vsel %vm79_vm6, %v1248_v54, %v662_v7  ;;  %v711_v14 = vsel %vm55_vm0, %v1259_v10, %v1258_v9  ;;  %s1375_s24 = smov 56   ;;  %v1250_v22 = vld [vmem:[%s2478_s0 + $0x6] sm:$0x1]   ;;  %v632_v28 = vsel %vm79_vm6, %v1240_v6, %v628_v23  ;;  %vm6_vm7 = vcmask 1043458  }
  0x35   :  { %v1261_v15 = vld [vmem:[%s2478_s0 + $0x73] sm:$0x8]   ;;  %667 = vrot.lane.b32.xlu1 %v666_v12, %s1375_s24  ;;  %v715_v19 = vsel %vm59_vm1, %v1260_v11, %v711_v14  ;;  %v1251_v25 = vld [vmem:[%s2478_s0 + $0x25] sm:$0x2]   ;;  %v1275_v37 = vld [vmem:[%s2478_s0 + $0x15] sm:$0x1]  }
  0x36   :  { %v1262_v16 = vld [vmem:[%s2478_s0 + $0x92] sm:$0x10]   ;;  %v719_v24 = vsel %vm63_vm2, %v1261_v15, %v715_v19  ;;  %v1252_v26 = vld [vmem:[%s2478_s0 + $0x44] sm:$0x4]   ;;  %v677_v30 = vsel %vm55_vm0, %v1251_v25, %v1250_v22  ;;  %v1276_v38 = vld [vmem:[%s2478_s0 + $0x34] sm:$0x2]  }
  0x37   :  { %v1263_v17 = vld [vmem:[%s2478_s0 + $0xb1] sm:$0x20]   ;;  %v1253_v27 = vld [vmem:[%s2478_s0 + $0x63] sm:$0x8]   ;;  %v723_v29 = vsel %vm67_vm3, %v1262_v16, %v719_v24  ;;  %633 = vrot.lane.b32.xlu0 %v632_v28, %s1375_s24  ;;  %v681_v35 = vsel %vm59_vm1, %v1252_v26, %v677_v30  ;;  %v780_v41 = vsel %vm55_vm0, %v1276_v38, %v1275_v37  ;;  %v1277_v42 = vld [vmem:[%s2478_s0 + $0x53] sm:$0x4]  }
  0x38   :  { %v1264_v20 = vld [vmem:[%s2478_s0 + $0xd0] sm:$0x40]   ;;  %v1254_v31 = vld [vmem:[%s2478_s0 + $0x82] sm:$0x10]   ;;  %v727_v34 = vsel %vm71_vm4, %v1263_v17, %v723_v29  ;;  %v685_v40 = vsel %vm63_vm2, %v1253_v27, %v681_v35  ;;  %v1278_v43 = vld [vmem:[%s2478_s0 + $0x72] sm:$0x8]   ;;  %v784_v47 = vsel %vm59_vm1, %v1277_v42, %v780_v41 }
  0x39   :  { %v1265_v21 = vld [vmem:[%s2478_s0 + $0xef] sm:$0x80]   ;;  %v1255_v32 = vld [vmem:[%s2478_s0 + $0xa1] sm:$0x20]   ;;  %v731_v39 = vsel %vm75_vm5, %v1264_v20, %v727_v34  ;;  %v1279_v44 = vld [vmem:[%s2478_s0 + $0x91] sm:$0x10]   ;;  %v689_v46 = vsel %vm67_vm3, %v1254_v31, %v685_v40  ;;  %v788_v52 = vsel %vm63_vm2, %v1278_v43, %v784_v47 }
  0x3a   :  { %v1256_v33 = vld [vmem:[%s2478_s0 + $0xc0] sm:$0x40]   ;;  %v735_v45 = vsel %vm79_vm6, %v1265_v21, %v731_v39  ;;  %v1280_v48 = vld [vmem:[%s2478_s0 + $0xb0] sm:$0x20]   ;;  %v693_v51 = vsel %vm71_vm4, %v1255_v32, %v689_v46  ;;  %v1267_v53 = vld [vmem:[%s2478_s0 + $0x5] sm:$0x1]   ;;  %v792_v57 = vsel %vm67_vm3, %v1279_v44, %v788_v52 }
  0x3b   :  { %v1257_v36 = vld [vmem:[%s2478_s0 + $0xdf] sm:$0x80]   ;;  %v1281_v49 = vld [vmem:[%s2478_s0 + $0xcf] sm:$0x40]   ;;  %736 = vrot.lane.b32.xlu1 %v735_v45, %s1376_s3  ;;  %v1268_v54 = vld [vmem:[%s2478_s0 + $0x24] sm:$0x2]   ;;  %v697_v56 = vsel %vm75_vm5, %v1256_v33, %v693_v51  ;;  %v796_v63 = vsel %vm71_vm4, %v1280_v48, %v792_v57 }
  0x3c   :  { %v1282_v50 = vld [vmem:[%s2478_s0 + $0xee] sm:$0x80]   ;;  %v1269_v55 = vld [vmem:[%s2478_s0 + $0x43] sm:$0x4]   ;;  %v746_v58 = vsel %vm55_vm0, %v1268_v54, %v1267_v53  ;;  %v701_v62 = vsel %vm79_vm6, %v1257_v36, %v697_v56  ;;  %v800_v3 = vsel %vm75_vm5, %v1281_v49, %v796_v63  ;;  %v1292_v5 = vld [vmem:[%s2478_s0 + $0x14] sm:$0x1]  }
  0x3d   :  { %v1270_v59 = vld [vmem:[%s2478_s0 + $0x62] sm:$0x8]   ;;  %v750_v0 = vsel %vm59_vm1, %v1269_v55, %v746_v58  ;;  %702 = vrot.lane.b32.xlu0 %v701_v62, %s1376_s3  ;;  %v1293_v6 = vld [vmem:[%s2478_s0 + $0x33] sm:$0x2]   ;;  %v804_v8 = vsel %vm79_vm6, %v1282_v50, %v800_v3  ;;  %s1377_s3 = smov 40   ;;  %s8_s9 = smov 48 }
  0x3e   :  { %v1271_v60 = vld [vmem:[%s2478_s0 + $0x81] sm:$0x10]   ;;  %v754_v4 = vsel %vm63_vm2, %v1270_v59, %v750_v0  ;;  %v1294_v7 = vld [vmem:[%s2478_s0 + $0x52] sm:$0x4]   ;;  %v849_v10 = vsel %vm55_vm0, %v1293_v6, %v1292_v5  ;;  %v1284_v18 = vld [vmem:[%s2478_s0 + $0x4] sm:$0x1]  }
  0x3f   :  { %v1272_v61 = vld [vmem:[%s2478_s0 + $0xa0] sm:$0x20]   ;;  %v758_v9 = vsel %vm67_vm3, %v1271_v60, %v754_v4  ;;  %v1295_v11 = vld [vmem:[%s2478_s0 + $0x71] sm:$0x8]   ;;  %805 = vrot.lane.b32.xlu1 %v804_v8, %s1377_s3  ;;  %v853_v15 = vsel %vm59_vm1, %v1294_v7, %v849_v10  ;;  %v1285_v21 = vld [vmem:[%s2478_s0 + $0x23] sm:$0x2]  }
  0x40   :  { %v1273_v1 = vld [vmem:[%s2478_s0 + $0xbf] sm:$0x40]   ;;  %v1296_v12 = vld [vmem:[%s2478_s0 + $0x90] sm:$0x10]   ;;  %v762_v14 = vsel %vm71_vm4, %v1272_v61, %v758_v9  ;;  %v857_v20 = vsel %vm63_vm2, %v1295_v11, %v853_v15  ;;  %v1286_v22 = vld [vmem:[%s2478_s0 + $0x42] sm:$0x4]   ;;  %v815_v26 = vsel %vm55_vm0, %v1285_v21, %v1284_v18 }
  0x41   :  { %v1274_v2 = vld [vmem:[%s2478_s0 + $0xde] sm:$0x80]   ;;  %v1297_v13 = vld [vmem:[%s2478_s0 + $0xaf] sm:$0x20]   ;;  %v766_v19 = vsel %vm75_vm5, %v1273_v1, %v762_v14  ;;  %v1287_v23 = vld [vmem:[%s2478_s0 + $0x61] sm:$0x8]   ;;  %v861_v25 = vsel %vm67_vm3, %v1296_v12, %v857_v20  ;;  %v819_v31 = vsel %vm59_vm1, %v1286_v22, %v815_v26 }
  0x42   :  { %v1298_v16 = vld [vmem:[%s2478_s0 + $0xce] sm:$0x40]   ;;  %v770_v24 = vsel %vm79_vm6, %v1274_v2, %v766_v19  ;;  %v1288_v27 = vld [vmem:[%s2478_s0 + $0x80] sm:$0x10]   ;;  %v865_v30 = vsel %vm71_vm4, %v1297_v13, %v861_v25  ;;  %v1309_v33 = vld [vmem:[%s2478_s0 + $0x13] sm:$0x1]   ;;  %v823_v36 = vsel %vm63_vm2, %v1287_v23, %v819_v31 }
  0x43   :  { %v1299_v17 = vld [vmem:[%s2478_s0 + $0xed] sm:$0x80]   ;;  %v1289_v28 = vld [vmem:[%s2478_s0 + $0x9f] sm:$0x20]   ;;  %771 = vrot.lane.b32.xlu0 %v770_v24, %s1377_s3  ;;  %v1310_v34 = vld [vmem:[%s2478_s0 + $0x32] sm:$0x2]   ;;  %v869_v35 = vsel %vm75_vm5, %v1298_v16, %v865_v30  ;;  %v827_v42 = vsel %vm67_vm3, %v1288_v27, %v823_v36 }
  0x44   :  { %v1290_v29 = vld [vmem:[%s2478_s0 + $0xbe] sm:$0x40]   ;;  %v918_v37 = vsel %vm55_vm0, %v1310_v34, %v1309_v33  ;;  %v1311_v38 = vld [vmem:[%s2478_s0 + $0x51] sm:$0x4]   ;;  %v873_v41 = vsel %vm79_vm6, %v1299_v17, %v869_v35  ;;  %v831_v47 = vsel %vm71_vm4, %v1289_v28, %v827_v42  ;;  %v1301_v49 = vld [vmem:[%s2478_s0 + $0x3] sm:$0x1]  }
  0x45   :  { %v1291_v32 = vld [vmem:[%s2478_s0 + $0xdd] sm:$0x80]   ;;  %v1312_v39 = vld [vmem:[%s2478_s0 + $0x70] sm:$0x8]   ;;  %v922_v43 = vsel %vm59_vm1, %v1311_v38, %v918_v37  ;;  %874 = vrot.lane.b32.xlu1 %v873_v41, %s1378_s12  ;;  %v1302_v50 = vld [vmem:[%s2478_s0 + $0x22] sm:$0x2]   ;;  %v835_v52 = vsel %vm75_vm5, %v1290_v29, %v831_v47 }
  0x46   :  { %v1313_v40 = vld [vmem:[%s2478_s0 + $0x8f] sm:$0x10]   ;;  %v926_v48 = vsel %vm63_vm2, %v1312_v39, %v922_v43  ;;  %v1303_v51 = vld [vmem:[%s2478_s0 + $0x41] sm:$0x4]   ;;  %v884_v54 = vsel %vm55_vm0, %v1302_v50, %v1301_v49  ;;  %v839_v58 = vsel %vm79_vm6, %v1291_v32, %v835_v52  ;;  %v1326_v1 = vld [vmem:[%s2478_s0 + $0x12] sm:$0x1]  }
  0x47   :  { %v1314_v44 = vld [vmem:[%s2478_s0 + $0xae] sm:$0x20]   ;;  %v930_v53 = vsel %vm67_vm3, %v1313_v40, %v926_v48  ;;  %v1304_v55 = vld [vmem:[%s2478_s0 + $0x60] sm:$0x8]   ;;  %v888_v60 = vsel %vm59_vm1, %v1303_v51, %v884_v54  ;;  %840 = vrot.lane.b32.xlu0 %v839_v58, %s1378_s12  ;;  %v1327_v2 = vld [vmem:[%s2478_s0 + $0x31] sm:$0x2]  }
  0x48   :  { %v1315_v45 = vld [vmem:[%s2478_s0 + $0xcd] sm:$0x40]   ;;  %v1305_v56 = vld [vmem:[%s2478_s0 + $0x7f] sm:$0x10]   ;;  %v934_v59 = vsel %vm71_vm4, %v1314_v44, %v930_v53  ;;  %v892_v0 = vsel %vm63_vm2, %v1304_v55, %v888_v60  ;;  %v1328_v3 = vld [vmem:[%s2478_s0 + $0x50] sm:$0x4]   ;;  %v987_v6 = vsel %vm55_vm0, %v1327_v2, %v1326_v1 }
  0x49   :  { %v1316_v46 = vld [vmem:[%s2478_s0 + $0xec] sm:$0x80]   ;;  %v1306_v57 = vld [vmem:[%s2478_s0 + $0x9e] sm:$0x20]   ;;  %v938_v63 = vsel %vm75_vm5, %v1315_v45, %v934_v59  ;;  %v896_v5 = vsel %vm67_vm3, %v1305_v56, %v892_v0  ;;  %v1329_v7 = vld [vmem:[%s2478_s0 + $0x6f] sm:$0x8]   ;;  %v991_v11 = vsel %vm59_vm1, %v1328_v3, %v987_v6 }
  0x4a   :  { %v1307_v61 = vld [vmem:[%s2478_s0 + $0xbd] sm:$0x40]   ;;  %v942_v4 = vsel %vm79_vm6, %v1316_v46, %v938_v63  ;;  %v1330_v8 = vld [vmem:[%s2478_s0 + $0x8e] sm:$0x10]   ;;  %s1379_s12 = smov 24   ;;  %v900_v10 = vsel %vm71_vm4, %v1306_v57, %v896_v5  ;;  %v995_v16 = vsel %vm63_vm2, %v1329_v7, %v991_v11  ;;  %vm10_vm8 = vcmask 1045508  }
  0x4b   :  { %v1308_v62 = vld [vmem:[%s2478_s0 + $0xdc] sm:$0x80]   ;;  %v1331_v9 = vld [vmem:[%s2478_s0 + $0xad] sm:$0x20]   ;;  %943 = vrot.lane.b32.xlu1 %v942_v4, %s1379_s12  ;;  %v1318_v14 = vld [vmem:[%s2478_s0 + $0x2] sm:$0x1]   ;;  %v904_v15 = vsel %vm75_vm5, %v1307_v61, %v900_v10  ;;  %v999_v21 = vsel %vm67_vm3, %v1330_v8, %v995_v16 }
  0x4c   :  { %v1332_v12 = vld [vmem:[%s2478_s0 + $0xcc] sm:$0x40]   ;;  %v1319_v17 = vld [vmem:[%s2478_s0 + $0x21] sm:$0x2]   ;;  %v908_v20 = vsel %vm79_vm6, %v1308_v62, %v904_v15  ;;  %v1003_v26 = vsel %vm71_vm4, %v1331_v9, %v999_v21  ;;  %v1343_v29 = vld [vmem:[%s2478_s0 + $0x11] sm:$0x1]  }
  0x4d   :  { %v1333_v13 = vld [vmem:[%s2478_s0 + $0xeb] sm:$0x80]   ;;  %v1320_v18 = vld [vmem:[%s2478_s0 + $0x40] sm:$0x4]   ;;  %v953_v22 = vsel %vm55_vm0, %v1319_v17, %v1318_v14  ;;  %909 = vrot.lane.b32.xlu0 %v908_v20, %s1379_s12  ;;  %v1344_v30 = vld [vmem:[%s2478_s0 + $0x30] sm:$0x2]   ;;  %v1007_v31 = vsel %vm75_vm5, %v1332_v12, %v1003_v26 }
  0x4e   :  { %v1321_v19 = vld [vmem:[%s2478_s0 + $0x5f] sm:$0x8]   ;;  %v957_v27 = vsel %vm59_vm1, %v1320_v18, %v953_v22  ;;  %v1056_v33 = vsel %vm55_vm0, %v1344_v30, %v1343_v29  ;;  %v1345_v34 = vld [vmem:[%s2478_s0 + $0x4f] sm:$0x4]   ;;  %v1011_v37 = vsel %vm79_vm6, %v1333_v13, %v1007_v31  ;;  %v1335_v45 = vld [vmem:[%s2478_s0 + $0x1] sm:$0x1]  }
  0x4f   :  { %v1322_v23 = vld [vmem:[%s2478_s0 + $0x7e] sm:$0x10]   ;;  %v961_v32 = vsel %vm63_vm2, %v1321_v19, %v957_v27  ;;  %v1346_v35 = vld [vmem:[%s2478_s0 + $0x6e] sm:$0x8]   ;;  %v1060_v39 = vsel %vm59_vm1, %v1345_v34, %v1056_v33  ;;  %1012 = vrot.lane.b32.xlu1 %v1011_v37, %s1380_s19  ;;  %v1336_v46 = vld [vmem:[%s2478_s0 + $0x20] sm:$0x2]  }
  0x50   :  { %v1323_v24 = vld [vmem:[%s2478_s0 + $0x9d] sm:$0x20]   ;;  %v1347_v36 = vld [vmem:[%s2478_s0 + $0x8d] sm:$0x10]   ;;  %v965_v38 = vsel %vm67_vm3, %v1322_v23, %v961_v32  ;;  %v1064_v44 = vsel %vm63_vm2, %v1346_v35, %v1060_v39  ;;  %v1337_v47 = vld [vmem:[%s2478_s0 + $0x3f] sm:$0x4]   ;;  %v1022_v50 = vsel %vm55_vm0, %v1336_v46, %v1335_v45 }
  0x51   :  { %v1324_v25 = vld [vmem:[%s2478_s0 + $0xbc] sm:$0x40]   ;;  %v1348_v40 = vld [vmem:[%s2478_s0 + $0xac] sm:$0x20]   ;;  %v969_v43 = vsel %vm71_vm4, %v1323_v24, %v965_v38  ;;  %v1068_v49 = vsel %vm67_vm3, %v1347_v36, %v1064_v44  ;;  %v1338_v51 = vld [vmem:[%s2478_s0 + $0x5e] sm:$0x8]   ;;  %v1026_v56 = vsel %vm59_vm1, %v1337_v47, %v1022_v50 }
  0x52   :  { %v1325_v28 = vld [vmem:[%s2478_s0 + $0xdb] sm:$0x80]   ;;  %v1349_v41 = vld [vmem:[%s2478_s0 + $0xcb] sm:$0x40]   ;;  %v973_v48 = vsel %vm75_vm5, %v1324_v25, %v969_v43  ;;  %v1339_v52 = vld [vmem:[%s2478_s0 + $0x7d] sm:$0x10]   ;;  %v1072_v55 = vsel %vm71_vm4, %v1348_v40, %v1068_v49  ;;  %v1030_v60 = vsel %vm63_vm2, %v1338_v51, %v1026_v56 }
  0x53   :  { %v1350_v42 = vld [vmem:[%s2478_s0 + $0xea] sm:$0x80]   ;;  %v1340_v53 = vld [vmem:[%s2478_s0 + $0x9c] sm:$0x20]   ;;  %v977_v54 = vsel %vm79_vm6, %v1325_v28, %v973_v48  ;;  %v1076_v59 = vsel %vm75_vm5, %v1349_v41, %v1072_v55  ;;  %s12_s10 = smov 192  ;;  %v1034_v63 = vsel %vm67_vm3, %v1339_v52, %v1030_v60  ;;  %vm14_vm9 = vcmask 1047558  }
  0x54   :  { %v1341_v57 = vld [vmem:[%s2478_s0 + $0xbb] sm:$0x40]   ;;  %978 = vrot.lane.b32.xlu0 %v977_v54, %s1380_s19  ;;  %v3_v61 = vld [vmem:[%s2478_s0] ss:$16 sm:%s2_s7]   ;;  %v1080_v62 = vsel %vm79_vm6, %v1350_v42, %v1076_v59  ;;  %s25_s14 = smov 3  ;;  %s28_s15 = smov 12  ;;  %v1038_v1 = vsel %vm71_vm4, %v1340_v53, %v1034_v63 }
  0x55   :  { %v1342_v58 = vld [vmem:[%s2478_s0 + $0xda] sm:$0x80]   ;;  %v5_v0 = vld [vmem:[%s2478_s0] ss:$16 sm:%s4_s8]   ;;  %s1381_s11 = smov 8   ;;  %vm16_vm10 = vcmask 64512   ;;  %v1042_v4 = vsel %vm75_vm5, %v1341_v57, %v1038_v1 }
  0x56   :  { %1081 = vrot.lane.b32.xlu1 %v1080_v62, %s1381_s11  ;;  %s33_s18 = smov 48  ;;  %s38_s19 = smov 192  ;;  %v7_v2 = vsel %vm6_vm7, %v5_v0, %v3_v61  ;;  %v9_v3 = vld [vmem:[%s2478_s0] ss:$16 sm:%s8_s9]   ;;  %v1046_v8 = vsel %vm79_vm6, %v1342_v58, %v1042_v4  ;;  %vm83_vm11 = vcmask 1048512   ;;  %vm152_vm12 = vcmask 982912  }
  0x57   :  { %v11_v5 = vsel %vm10_vm8, %v9_v3, %v7_v2  ;;  %v13_v6 = vld [vmem:[%s2478_s0] ss:$16 sm:%s12_s10]   ;;  %vm221_vm13 = vcmask 917312   ;;  %vm290_vm14 = vcmask 851712   ;;  %vm359_vm15 = vcmask 786112  }
  0x58   :  { %v1089_v7 = vld [vmem:[%s2478_s0 + $0x80] ss:$16 sm:%s25_s14]   ;;  %v15_v9 = vsel %vm14_vm9, %v13_v6, %v11_v5  ;;  %1047 = vrot.lane.b32.xlu0 %v1046_v8, %s1381_s11  ;;  %vm428_vm0 = vcmask 720512   ;;  %vm497_vm1 = vcmask 654912   ;;  %vm566_vm2 = vcmask 589312  }
  0x59   :  { %v1090_v10 = vld [vmem:[%s2478_s0 + $0x80] ss:$16 sm:%s28_s15]   ;;  %17 = vst.msk [vmem:[%s2479_s1] ss:$8 sm:$0x3] %vm16_vm10, %v15_v9   ;;  %vm635_vm3 = vcmask 523712  }
  0x5a   :  { %v1091_v11 = vld [vmem:[%s2478_s0 + $0x80] ss:$16 sm:%s33_s18]   ;;  %1086 = vst.msk [vmem:[%s2479_s1 - $0xf] ss:$8 sm:$0xc] %vm16_vm10, %v15_v9   ;;  %v31_v12 = vsel %vm6_vm7, %v1090_v10, %v1089_v7  ;;  %vm704_vm4 = vcmask 458112  }
  0x5b   :  { %1087 = vst.msk [vmem:[%s2479_s1 - $0x1e] ss:$8 sm:$0x30] %vm16_vm10, %v15_v9   ;;  %1088 = vst.msk [vmem:[%s2479_s1 - $0x2d] ss:$8 sm:$0xc0] %vm16_vm10, %v15_v9   ;;  %v36_v14 = vsel %vm10_vm8, %v1091_v11, %v31_v12 }
  0x5c   :  { %v1092_v13 = vld [vmem:[%s2478_s0 + $0x80] ss:$16 sm:%s38_s19]   ;;  %vm773_vm5 = vcmask 392512   ;;  %vm842_vm6 = vcmask 326912   ;;  %vm911_vm7 = vcmask 261312   ;;  %vm980_vm8 = vcmask 195712  }
  0x5d   :  { %v41_v15 = vsel %vm14_vm9, %v1092_v13, %v36_v14  ;;  %vm1049_vm9 = vcmask 130112  }
  0x5e   :  { %1093 = vst.msk [vmem:[%s2479_s1 + $0x4] ss:$8 sm:$0x3] %vm16_vm10, %v41_v15   ;;  %1094 = vst.msk [vmem:[%s2479_s1 - $0xb] ss:$8 sm:$0xc] %vm16_vm10, %v41_v15  }
  0x5f   :  { %1095 = vst.msk [vmem:[%s2479_s1 - $0x1a] ss:$8 sm:$0x30] %vm16_vm10, %v41_v15   ;;  %1096 = vst.msk [vmem:[%s2479_s1 - $0x29] ss:$8 sm:$0xc0] %vm16_vm10, %v41_v15  }
  0x7c   :  { %v151_v16 = vpop.permute.xlu1 %150  }
  0x7d   :  { %v82_v17 = vpop.permute.xlu0 %81  }
  0x7e   :  { %84 = vst.msk [vmem:[%s2479_s1] sm:$0xff] %vm83_vm11, %v82_v17  }
  0x7f   :  { %153 = vst.msk [vmem:[%s2479_s1] sm:$0xff] %vm152_vm12, %v151_v16  }
  0x80   :  { %v185_v18 = vpop.permute.xlu1 %184  }
  0x84   :  { %v116_v19 = vpop.permute.xlu0 %115  }
  0x85   :  { %1113 = vst.msk [vmem:[%s2479_s1 + $0x8] sm:$0xff] %vm83_vm11, %v116_v19   ;;  %v254_v20 = vpop.permute.xlu1 %253  }
  0x86   :  { %1130 = vst.msk [vmem:[%s2479_s1 + $0x8] sm:$0xff] %vm152_vm12, %v185_v18  }
  0x87   :  { %1147 = vst.msk [vmem:[%s2479_s1 + $0x8] sm:$0xff] %vm221_vm13, %v254_v20  }
  0x88   :  { %v220_v21 = vpop.permute.xlu0 %219  }
  0x89   :  { %222 = vst.msk [vmem:[%s2479_s1] sm:$0xff] %vm221_vm13, %v220_v21  }
  0x8c   :  { %v323_v22 = vpop.permute.xlu1 %322  }
  0x8d   :  { %1164 = vst.msk [vmem:[%s2479_s1 + $0x8] sm:$0xff] %vm290_vm14, %v323_v22   ;;  %v289_v23 = vpop.permute.xlu0 %288  }
  0x8e   :  { %291 = vst.msk [vmem:[%s2479_s1] sm:$0xff] %vm290_vm14, %v289_v23  }
  0x90   :  { %v392_v24 = vpop.permute.xlu1 %391  }
  0x91   :  { %1181 = vst.msk [vmem:[%s2479_s1 + $0x8] sm:$0xff] %vm359_vm15, %v392_v24  }
  0x95   :  { %v358_v25 = vpop.permute.xlu0 %357   ;;  %v461_v26 = vpop.permute.xlu1 %460  }
  0x96   :  { %360 = vst.msk [vmem:[%s2479_s1] sm:$0xff] %vm359_vm15, %v358_v25  }
  0x97   :  { %1198 = vst.msk [vmem:[%s2479_s1 + $0x8] sm:$0xff] %vm428_vm0, %v461_v26  }
  0x99   :  { %v427_v27 = vpop.permute.xlu0 %426  }
  0x9a   :  { %429 = vst.msk [vmem:[%s2479_s1] sm:$0xff] %vm428_vm0, %v427_v27  }
  0x9d   :  { %v530_v28 = vpop.permute.xlu1 %529   ;;  %v496_v29 = vpop.permute.xlu0 %495  }
  0x9e   :  { %1215 = vst.msk [vmem:[%s2479_s1 + $0x8] sm:$0xff] %vm497_vm1, %v530_v28   ;;  %498 = vst.msk [vmem:[%s2479_s1] sm:$0xff] %vm497_vm1, %v496_v29  }
  0xa1   :  { %v599_v30 = vpop.permute.xlu1 %598  }
  0xa2   :  { %1232 = vst.msk [vmem:[%s2479_s1 + $0x8] sm:$0xff] %vm566_vm2, %v599_v30  }
  0xa5   :  { %v565_v31 = vpop.permute.xlu0 %564  }
  0xa6   :  { %567 = vst.msk [vmem:[%s2479_s1] sm:$0xff] %vm566_vm2, %v565_v31  }
  0xa7   :  { %v668_v32 = vpop.permute.xlu1 %667  }
  0xa8   :  { %1249 = vst.msk [vmem:[%s2479_s1 + $0x8] sm:$0xff] %vm635_vm3, %v668_v32  }
  0xa9   :  { %v634_v33 = vpop.permute.xlu0 %633  }
  0xaa   :  { %636 = vst.msk [vmem:[%s2479_s1] sm:$0xff] %vm635_vm3, %v634_v33  }
  0xad   :  { %v737_v34 = vpop.permute.xlu1 %736  }
  0xae   :  { %1266 = vst.msk [vmem:[%s2479_s1 + $0x8] sm:$0xff] %vm704_vm4, %v737_v34  }
  0xaf   :  { %v703_v35 = vpop.permute.xlu0 %702  }
  0xb0   :  { %705 = vst.msk [vmem:[%s2479_s1] sm:$0xff] %vm704_vm4, %v703_v35  }
  0xb1   :  { %v806_v36 = vpop.permute.xlu1 %805  }
  0xb2   :  { %1283 = vst.msk [vmem:[%s2479_s1 + $0x8] sm:$0xff] %vm773_vm5, %v806_v36  }
  0xb5   :  { %v772_v37 = vpop.permute.xlu0 %771  }
  0xb6   :  { %774 = vst.msk [vmem:[%s2479_s1] sm:$0xff] %vm773_vm5, %v772_v37  }
  0xb7   :  { %v875_v38 = vpop.permute.xlu1 %874  }
  0xb8   :  { %1300 = vst.msk [vmem:[%s2479_s1 + $0x8] sm:$0xff] %vm842_vm6, %v875_v38  }
  0xb9   :  { %v841_v39 = vpop.permute.xlu0 %840  }
  0xba   :  { %843 = vst.msk [vmem:[%s2479_s1] sm:$0xff] %vm842_vm6, %v841_v39  }
  0xbd   :  { %v944_v40 = vpop.permute.xlu1 %943  }
  0xbe   :  { %1317 = vst.msk [vmem:[%s2479_s1 + $0x8] sm:$0xff] %vm911_vm7, %v944_v40  }
  0xbf   :  { %v910_v41 = vpop.permute.xlu0 %909  }
  0xc0   :  { %912 = vst.msk [vmem:[%s2479_s1] sm:$0xff] %vm911_vm7, %v910_v41  }
  0xc1   :  { %v1013_v42 = vpop.permute.xlu1 %1012  }
  0xc2   :  { %1334 = vst.msk [vmem:[%s2479_s1 + $0x8] sm:$0xff] %vm980_vm8, %v1013_v42  }
  0xc6   :  { %v979_v43 = vpop.permute.xlu0 %978  }
  0xc7   :  { %981 = vst.msk [vmem:[%s2479_s1] sm:$0xff] %vm980_vm8, %v979_v43  }
  0xc8   :  { %v1082_v44 = vpop.permute.xlu1 %1081  }
  0xc9   :  { %1351 = vst.msk [vmem:[%s2479_s1 + $0x8] sm:$0xff] %vm1049_vm9, %v1082_v44  }
  0xca   :  { %v1048_v45 = vpop.permute.xlu0 %1047  }
  0xcb   :  { %1050 = vst.msk [vmem:[%s2479_s1] sm:$0xff] %vm1049_vm9, %v1048_v45  }

// kernel: dense_to_sparse.1
= control target key start
LH: loop header
LB: loop body
LE: loop exit
PB: predicated region body
PF: predicated region fallthrough
CT: control target
= control target key end

     0   :  { %vm55_vm0 = vcmask 130048   ;;  %v185_v6 = vmov 0.0   ;;  %v66_v7 = vlaneseq  ;;  %vm76_vm1 = vcmask 1041409   ;;  %s259_s2 = inlined_call_operand.vmem [shape: f32[2,8,16], index: 2, kind: input, shape index: {}]   ;;  %s260_s3 = inlined_call_operand.vmem [shape: f32[8,256], index: 3, kind: input, shape index: {}]   ;;  %s261_s0 = inlined_call_operand.vmem [shape: f32[2,256], index: 0, kind: input, shape index: {}]   ;;  %s262_s4 = inlined_call_operand.vmem [shape: f32[2,512], index: 4, kind: output, shape index: {}]   ;;  %s263_s1 = inlined_call_operand.vmem [shape: f32[2,16,256], index: 1, kind: input, shape index: {}]  }
   0x1   :  { %v53_v0 = vld [vmem:[%s259_s2] sm:$0xff]  ;;  %v54_v1 = vld [vmem:[%s259_s2 + $0x8] sm:$0xff]  ;;  %145 = vmatprep.mubr.f32.mxu0 %v185_v6  ;;  %vm78_vm2 = vcmask 64512   ;;  %v19_v18 = vld [vmem:[%s263_s1 + $0x10] sm:$0xff] }
   0x2   :  { %v56_v2 = vsel %vm55_vm0, %v53_v0, -inf  ;;  %v59_v3 = vsel %vm55_vm0, %v54_v1, -inf  ;;  %v63_v4 = vld [vmem:[%s260_s3 + $0x8] sm:$0xff]  ;;  %v62_v5 = vld [vmem:[%s260_s3] sm:$0xff]  ;;  %v67_v8 = vand.u32 127, %v66_v7  ;;  %v69_v9 = vshrl.u32 %v66_v7, 7 }
   0x3   :  { %57 = vmax.xlane.f32.xlu0 %v56_v2  ;;  %81 = vmatprep.subr.mxu0 %v63_v4  ;;  %v164_v16 = vld [vmem:[%s261_s0] sm:$0xf]  ;;  %v23_v20 = vld [vmem:[%s263_s1 + $0x30] sm:$0xff]  ;;  %v18_v21 = vld [vmem:[%s263_s1 + $0x8] sm:$0xff] }
   0x4   :  { %82 = vmatpush1.msra.mxu0 %v62_v5  ;;  %v70_v11 = vsub.s32 %v67_v8, %v69_v9  ;;  %165 = vst [vmem:[%s262_s4] sm:$0xf] %v164_v16  ;;  %v17_v17 = vld [vmem:[%s263_s1] sm:$0xff]  ;;  %v20_v22 = vld [vmem:[%s263_s1 + $0x18] sm:$0xff]  ;;  %v22_v23 = vld [vmem:[%s263_s1 + $0x28] sm:$0xff] }
   0x5   :  { %v21_v19 = vld [vmem:[%s263_s1 + $0x20] sm:$0xff]  ;;  %v24_v24 = vld [vmem:[%s263_s1 + $0x38] sm:$0xff]  ;;  %v25_v25 = vmax.f32 %v17_v17, %v19_v18  ;;  %v32_v27 = vmax.f32 %v18_v21, %v20_v22 }
   0x6   :  { %v39_v26 = vmax.f32 %v21_v19, %v23_v20  ;;  %v46_v28 = vmax.f32 %v22_v23, %v24_v24 }
   0x7   :  { %60 = vmax.xlane.f32.xlu0 %v59_v3  ;;  %v26_v29 = vrot.slane %v25_v25, 4  ;;  %v33_v31 = vrot.slane %v32_v27, 4 }
   0x8   :  { %v40_v30 = vrot.slane %v39_v26, 4  ;;  %v47_v32 = vrot.slane %v46_v28, 4 }
   0x9   :  { %v27_v33 = vmax.f32 %v25_v25, %v26_v29  ;;  %v34_v35 = vmax.f32 %v32_v27, %v33_v31 }
   0xa   :  { %v41_v34 = vmax.f32 %v39_v26, %v40_v30  ;;  %v48_v36 = vmax.f32 %v46_v28, %v47_v32 }
   0xb   :  { %v28_v37 = vrot.slane %v27_v33, 2  ;;  %v35_v39 = vrot.slane %v34_v35, 2 }
   0xc   :  { %v42_v38 = vrot.slane %v41_v34, 2  ;;  %v49_v40 = vrot.slane %v48_v36, 2 }
   0xd   :  { %v29_v41 = vmax.f32 %v27_v33, %v28_v37  ;;  %v36_v43 = vmax.f32 %v34_v35, %v35_v39 }
   0xe   :  { %v43_v42 = vmax.f32 %v41_v34, %v42_v38  ;;  %v50_v44 = vmax.f32 %v48_v36, %v49_v40 }
   0xf   :  { %v30_v45 = vrot.slane %v29_v41, 1  ;;  %v37_v47 = vrot.slane %v36_v43, 1 }
  0x10   :  { %v44_v46 = vrot.slane %v43_v42, 1  ;;  %v51_v48 = vrot.slane %v50_v44, 1 }
  0x11   :  { %v31_v49 = vmax.f32 %v29_v41, %v30_v45  ;;  %v38_v51 = vmax.f32 %v36_v43, %v37_v47 }
  0x12   :  { %v45_v50 = vmax.f32 %v43_v42, %v44_v46  ;;  %v52_v52 = vmax.f32 %v50_v44, %v51_v48 }
  0x14   :  { %v158_v53 = vsel %vm76_vm1, %v45_v50, %v31_v49  ;;  %v159_v55 = vsel %vm76_vm1, %v52_v52, %v38_v51 }
  0x90   :  { %v58_v10 = vpop.xlane.xlu0 %57 }
  0x91   :  { %v71_v13 = vrot.slane %v58_v10, %v70_v11 }
  0x94   :  { %v61_v12 = vpop.xlane.xlu0 %60 }
  0x95   :  { %v75_v14 = vrot.slane %v61_v12, %v70_v11 }
  0x97   :  { %v77_v15 = vsel %vm76_vm1, %v75_v14, %v71_v13 }
  0x98   :  { %182 = vmatmul.mubr.msk.f32.vlgmr.msra.gmra.mrb[0].mxu0 %vm78_vm2, %v77_v15 }
 0x16b   :  { %v147_v54 = vpop.f32.mrb[0].mxu0 }
 0x16c   :  { %vm152_vm3 = vcmp.ne.f32.partialorder %v147_v54, 0.0  ;;  %v149_v56 = vpop.f32.mrb[1].mxu0 }
 0x16d   :  { %v162_v57 = vsel %vm152_vm3, %v158_v53, 0.0  ;;  %vm153_vm4 = vcmp.ne.f32.partialorder %v149_v56, 0.0 }
 0x16e   :  { %v163_v58 = vsel %vm153_vm4, %v159_v55, 0.0 }
 0x16f   :  { %v168_v59 = vcombine.low %v162_v57, %v163_v58 }
 0x171   :  { %183 = vst.sshfl [vmem:[%s262_s4 + $0x4] sm:$0x33 pattern:$0x76325410] %v168_v59 }

</bundles_post_ra>
